<compile_context>
chip_gen: v7x
topology: tpu7x:2x2x1
jax: 0.10.0
libtpu: 0.0.40
codegen_flags: <defaults>
</compile_context>

<pallas_src>
import jax
import jax.numpy as jnp
from jax.experimental import pallas as pl
from jax.experimental.pallas import tpu as pltpu

EMBEDDING_SIZE = 52
N_COMPONENTS = 20
IN_FEATURES = EMBEDDING_SIZE + N_COMPONENTS   # 72
HIDDEN = 256
OUT_PAD = 128                                 # MXU-friendly width of the 1-wide layer
LEAKY_SLOPE = 0.01                            # torch.nn.LeakyReLU default


def _round_up(x, m):
    return (x + m - 1) // m * m


def _discriminator_kernel(fault_ref, att_ref, w1a_ref, w1b_ref, b1_ref,
                          w2_ref, b2_ref, out_ref):
    # fault: (TB, 52) f32, att: (TB, 20) f32   (streamed; cast to bf16 here)
    # w1a: (52, 256) bf16, w1b: (20, 256) bf16, b1: (1, 256) f32
    # w2 : (256, 128) f32 (only column 0 nonzero), b2: (1, 128) f32 (all lanes = b2)
    # out: (TB//128, 128) f32, lane-packed: out[j, r] = prob[j*128 + r]
    f = fault_ref[...].astype(jnp.bfloat16)
    a = att_ref[...].astype(jnp.bfloat16)

    # Linear(72 -> 256) with the concat fused as two matmuls, f32 accumulation.
    h = jnp.dot(f, w1a_ref[...], preferred_element_type=jnp.float32)
    h = h + jnp.dot(a, w1b_ref[...], preferred_element_type=jnp.float32)
    h = h + b1_ref[...]
    # LeakyReLU(0.01)
    h = jnp.where(h > 0, h, LEAKY_SLOPE * h)

    # Linear(256 -> 1), padded to 128 lanes so the MXU result is lane-dense.
    o = jnp.dot(h, w2_ref[...], preferred_element_type=jnp.float32)   # (TB, 128)

    # Lane-pack the scalar column: transpose each 128x128 row block (XLU) and
    # keep row 0 -> 128 consecutive batch rows occupy 128 lanes of one row.
    tb = o.shape[0]
    nb = tb // 128
    o3 = o.reshape(nb, 128, 128)
    packed = jnp.transpose(o3, (0, 2, 1))[:, 0, :]                     # (nb, 128)
    packed = packed + b2_ref[...]                                      # scalar bias
    out_ref[...] = jax.nn.sigmoid(packed).astype(out_ref.dtype)


def prepare_params(params):
    """One-time parameter prep (hoist out of the per-step forward).

    Splits W1 for the fused concat, casts layer-1 weights to bf16, zero-pads the
    256->1 layer to 256->128, and broadcasts the scalar bias across 128 lanes.
    """
    w1, b1, w2, b2 = params
    w1a = w1[:EMBEDDING_SIZE].astype(jnp.bfloat16)                     # (52, 256)
    w1b = w1[EMBEDDING_SIZE:].astype(jnp.bfloat16)                     # (20, 256)
    b1r = b1.reshape(1, HIDDEN).astype(jnp.float32)                    # (1, 256)
    w2p = jnp.zeros((HIDDEN, OUT_PAD), jnp.float32).at[:, 0].set(
        w2.reshape(HIDDEN).astype(jnp.float32))                        # (256, 128)
    b2v = jnp.broadcast_to(b2.reshape(1, 1).astype(jnp.float32), (1, OUT_PAD))
    return w1a, w1b, b1r, w2p, b2v


def _choose_tile(b, tb_max):
    """Pick a batch tile: multiple of 128 (lane-pack), big enough to amortize
    per-step overhead, and keeping >= 2 grid steps for v7x's two TensorCores
    when the batch is large enough."""
    tb_max = max(128, _round_up(tb_max, 128))
    if b > 2 * 128:
        target = _round_up((b + 1) // 2, 128)
    else:
        target = _round_up(b, 128)
    return max(128, min(tb_max, target))


def discriminator_forward(fault, att, prepared_params, *, tb_max=4096):
    """fault: (B, ...) flattening to (B, 52); att: (B, 20). Returns (B, 1) f32."""
    b = fault.shape[0]
    fault2 = fault.reshape(b, -1)
    assert fault2.shape[1] == EMBEDDING_SIZE, fault2.shape
    assert att.shape == (b, N_COMPONENTS), att.shape
    if fault2.dtype != jnp.float32:
        fault2 = fault2.astype(jnp.float32)
    if att.dtype != jnp.float32:
        att = att.astype(jnp.float32)

    w1a, w1b, b1r, w2p, b2v = prepared_params

    tb = _choose_tile(b, tb_max)
    num_blocks = pl.cdiv(b, tb)        # ragged tail -> partial last block (rows
    nb = tb // 128                     # are independent; tail outputs discarded)
    rows = num_blocks * tb

    cost = pl.CostEstimate(
        flops=2 * rows * (IN_FEATURES * HIDDEN + HIDDEN * OUT_PAD),
        transcendentals=2 * rows,      # sigmoid ~ exp + reciprocal per row
        bytes_accessed=(rows * (IN_FEATURES * 4 + 4)            # streamed act + packed out
                        + IN_FEATURES * HIDDEN * 2              # w1a + w1b (bf16)
                        + HIDDEN * 4 + HIDDEN * OUT_PAD * 4 + OUT_PAD * 4))

    out = pl.pallas_call(
        _discriminator_kernel,
        out_shape=jax.ShapeDtypeStruct((num_blocks, nb, 128), jnp.float32),
        grid=(num_blocks,),
        in_specs=[
            # Streamed activation tiles (f32 straight from HBM).
            pl.BlockSpec((tb, EMBEDDING_SIZE), lambda i: (i, 0)),
            pl.BlockSpec((tb, N_COMPONENTS), lambda i: (i, 0)),
            # Weights: constant index_map -> resident in VMEM across grid steps.
            pl.BlockSpec((EMBEDDING_SIZE, HIDDEN), lambda i: (0, 0)),
            pl.BlockSpec((N_COMPONENTS, HIDDEN), lambda i: (0, 0)),
            pl.BlockSpec((1, HIDDEN), lambda i: (0, 0)),
            pl.BlockSpec((HIDDEN, OUT_PAD), lambda i: (0, 0)),
            pl.BlockSpec((1, OUT_PAD), lambda i: (0, 0)),
        ],
        # Lane-packed output block: 4 B/row writeback instead of 512 B/row.
        out_specs=pl.BlockSpec((None, nb, 128), lambda i: (i, 0, 0)),
        compiler_params=pltpu.CompilerParams(
            dimension_semantics=("parallel",),
            vmem_limit_bytes=32 * 1024 * 1024,
        ),
        cost_estimate=cost,
    )(fault2, att, w1a, w1b, b1r, w2p, b2v)

    # (num_blocks, nb, 128) flattens row-major into batch order; drop padded tail.
    return out.reshape(-1)[:b].reshape(b, 1)


def init_params(key):
    """nn.Linear-style U(-1/sqrt(fan_in), 1/sqrt(fan_in)); weights stored (in, out)."""
    k1, k2, k3, k4 = jax.random.split(key, 4)
    lim1 = 1.0 / jnp.sqrt(jnp.float32(IN_FEATURES))
    lim2 = 1.0 / jnp.sqrt(jnp.float32(HIDDEN))
    w1 = jax.random.uniform(k1, (IN_FEATURES, HIDDEN), jnp.float32, -lim1, lim1)
    b1 = jax.random.uniform(k2, (HIDDEN,), jnp.float32, -lim1, lim1)
    w2 = jax.random.uniform(k3, (HIDDEN, 1), jnp.float32, -lim2, lim2)
    b2 = jax.random.uniform(k4, (1,), jnp.float32, -lim2, lim2)
    return w1, b1, w2, b2


if __name__ == "__main__":
    key = jax.random.PRNGKey(0)
    kp, kf, ka = jax.random.split(key, 3)

    params = init_params(kp)
    prepped = prepare_params(params)   # one-time param prep, hoisted out of forward

    # NOTE: at B=8 the work is launch-latency bound; the kernel is sized for
    # large-batch GAN training but runs correctly at any B.
    B = 8
    fault = jax.random.normal(kf, (B, EMBEDDING_SIZE), dtype=jnp.float32)
    att = jax.random.normal(ka, (B, N_COMPONENTS), dtype=jnp.float32)

    prob = jax.block_until_ready(discriminator_forward(fault, att, prepped))

    # Sanity: shape + valid probabilities.
    assert prob.shape == (B, 1)
    assert bool(jnp.all((prob >= 0.0) & (prob <= 1.0)))

    w1, b1, w2, b2 = params
    z = jnp.concatenate([fault.reshape(B, -1), att], axis=-1)

    # (1) Full-f32 reference of the original module math (loose tol: bf16 layer 1).
    h = z @ w1 + b1
    h = jnp.where(h > 0, h, LEAKY_SLOPE * h)
    ref_f32 = jax.nn.sigmoid(h @ w2 + b2.reshape(1, 1))
    assert bool(jnp.allclose(prob, ref_f32, atol=3e-2)), "mismatch vs f32 reference"

    # (2) Reference matching the kernel's precision path (bf16 layer-1, f32 acc).
    zb = z.astype(jnp.bfloat16)
    hb = (jnp.dot(zb[:, :EMBEDDING_SIZE], w1[:EMBEDDING_SIZE].astype(jnp.bfloat16),
                  preferred_element_type=jnp.float32)
          + jnp.dot(zb[:, EMBEDDING_SIZE:], w1[EMBEDDING_SIZE:].astype(jnp.bfloat16),
                    preferred_element_type=jnp.float32)
          + b1)
    hb = jnp.where(hb > 0, hb, LEAKY_SLOPE * hb)
    ref_bf16 = jax.nn.sigmoid(hb @ w2 + b2.reshape(1, 1))
    assert bool(jnp.allclose(prob, ref_bf16, atol=2e-3, rtol=2e-3)), \
        "mismatch vs bf16-path reference"

    print("KERNEL_OK")
</pallas_src>

<mosaic_0001>
module attributes {stable_mosaic.version = 11 : i64} {
  func.func @_discriminator_kernel(%arg0: i32, %arg1: memref<128x52xf32, #tpu.memory_space<vmem>>, %arg2: memref<128x20xf32, #tpu.memory_space<vmem>>, %arg3: memref<52x256xbf16, #tpu.memory_space<vmem>>, %arg4: memref<20x256xbf16, #tpu.memory_space<vmem>>, %arg5: memref<1x256xf32, #tpu.memory_space<vmem>>, %arg6: memref<256x128xf32, #tpu.memory_space<vmem>>, %arg7: memref<1x128xf32, #tpu.memory_space<vmem>>, %arg8: memref<1x1x128xf32, #tpu.memory_space<vmem>>) attributes {dimension_semantics = [#tpu.dimension_semantics<parallel>], iteration_bounds = array<i64: 1>, scalar_prefetch = 0 : i64, scratch_operands = 0 : i64, tpu.core_type = #tpu.core_type<tc>, window_params = [{transform_indices = @transform_0, window_bounds = array<i64: 128, 52>}, {transform_indices = @transform_1, window_bounds = array<i64: 128, 20>}, {pipeline_mode = #tpu.pipeline_mode<synchronous>, transform_indices = @transform_2, window_bounds = array<i64: 52, 256>}, {pipeline_mode = #tpu.pipeline_mode<synchronous>, transform_indices = @transform_3, window_bounds = array<i64: 20, 256>}, {pipeline_mode = #tpu.pipeline_mode<synchronous>, transform_indices = @transform_4, window_bounds = array<i64: 1, 256>}, {pipeline_mode = #tpu.pipeline_mode<synchronous>, transform_indices = @transform_5, window_bounds = array<i64: 256, 128>}, {pipeline_mode = #tpu.pipeline_mode<synchronous>, transform_indices = @transform_6, window_bounds = array<i64: 1, 128>}, {transform_indices = @transform_7, window_bounds = array<i64: 1, 1, 128>}]} {
    %c0 = arith.constant 0 : index
    %c0_0 = arith.constant 0 : index
    %0 = vector.load %arg1[%c0, %c0_0] : memref<128x52xf32, #tpu.memory_space<vmem>>, vector<128x52xf32>
    %1 = arith.truncf %0 : vector<128x52xf32> to vector<128x52xbf16>
    %c0_1 = arith.constant 0 : index
    %c0_2 = arith.constant 0 : index
    %2 = vector.load %arg2[%c0_1, %c0_2] : memref<128x20xf32, #tpu.memory_space<vmem>>, vector<128x20xf32>
    %3 = arith.truncf %2 : vector<128x20xf32> to vector<128x20xbf16>
    %c0_3 = arith.constant 0 : index
    %c0_4 = arith.constant 0 : index
    %4 = vector.load %arg3[%c0_3, %c0_4] : memref<52x256xbf16, #tpu.memory_space<vmem>>, vector<52x256xbf16>
    %cst = arith.constant dense<0.000000e+00> : vector<128x256xf32>
    %5 = tpu.matmul %1, %4, %cst {dimension_numbers = #tpu.dot_dimension_numbers<[1], [0], [0], [1], [0, 0, 1, 1], [], []>} : vector<128x52xbf16>, vector<52x256xbf16>, vector<128x256xf32> -> vector<128x256xf32>
    %c0_5 = arith.constant 0 : index
    %c0_6 = arith.constant 0 : index
    %6 = vector.load %arg4[%c0_5, %c0_6] : memref<20x256xbf16, #tpu.memory_space<vmem>>, vector<20x256xbf16>
    %cst_7 = arith.constant dense<0.000000e+00> : vector<128x256xf32>
    %7 = tpu.matmul %3, %6, %cst_7 {dimension_numbers = #tpu.dot_dimension_numbers<[1], [0], [0], [1], [0, 0, 1, 1], [], []>} : vector<128x20xbf16>, vector<20x256xbf16>, vector<128x256xf32> -> vector<128x256xf32>
    %8 = arith.addf %5, %7 : vector<128x256xf32>
    %c0_8 = arith.constant 0 : index
    %c0_9 = arith.constant 0 : index
    %9 = vector.load %arg5[%c0_8, %c0_9] : memref<1x256xf32, #tpu.memory_space<vmem>>, vector<1x256xf32>
    %10 = vector.broadcast %9 : vector<1x256xf32> to vector<128x256xf32>
    %11 = arith.addf %8, %10 : vector<128x256xf32>
    %cst_10 = arith.constant 0.000000e+00 : f32
    %12 = vector.broadcast %cst_10 : f32 to vector<128x256xf32>
    %13 = arith.cmpf ogt, %11, %12 : vector<128x256xf32>
    %cst_11 = arith.constant 0.00999999977 : f32
    %14 = vector.broadcast %cst_11 : f32 to vector<128x256xf32>
    %15 = arith.mulf %14, %11 : vector<128x256xf32>
    %16 = arith.select %13, %11, %15 : vector<128x256xi1>, vector<128x256xf32>
    %c0_12 = arith.constant 0 : index
    %c0_13 = arith.constant 0 : index
    %17 = vector.load %arg6[%c0_12, %c0_13] : memref<256x128xf32, #tpu.memory_space<vmem>>, vector<256x128xf32>
    %cst_14 = arith.constant dense<0.000000e+00> : vector<128x128xf32>
    %18 = tpu.matmul %16, %17, %cst_14 {dimension_numbers = #tpu.dot_dimension_numbers<[1], [0], [0], [1], [0, 0, 1, 1], [], []>} : vector<128x256xf32>, vector<256x128xf32>, vector<128x128xf32> -> vector<128x128xf32>
    %19 = vector.shape_cast %18 : vector<128x128xf32> to vector<1x128x128xf32>
    %20 = tpu.transpose %19, [0, 2, 1] : vector<1x128x128xf32> -> vector<1x128x128xf32>
    %21 = vector.extract_strided_slice %20 {offsets = [0, 0, 0], sizes = [1, 1, 128], strides = [1, 1, 1]} : vector<1x128x128xf32> to vector<1x1x128xf32>
    %22 = vector.shape_cast %21 : vector<1x1x128xf32> to vector<1x128xf32>
    %c0_15 = arith.constant 0 : index
    %c0_16 = arith.constant 0 : index
    %23 = vector.load %arg7[%c0_15, %c0_16] : memref<1x128xf32, #tpu.memory_space<vmem>>, vector<1x128xf32>
    %24 = arith.addf %22, %23 : vector<1x128xf32>
    %25 = arith.negf %24 : vector<1x128xf32>
    %26 = math.exp %25 : vector<1x128xf32>
    %cst_17 = arith.constant 1.000000e+00 : f32
    %27 = vector.broadcast %cst_17 : f32 to vector<1x128xf32>
    %28 = arith.addf %27, %26 : vector<1x128xf32>
    %29 = arith.divf %27, %28 : vector<1x128xf32>
    %c0_18 = arith.constant 0 : index
    %c0_19 = arith.constant 0 : index
    %c0_20 = arith.constant 0 : index
    %30 = vector.load %arg8[%c0_18, %c0_19, %c0_20] : memref<1x1x128xf32, #tpu.memory_space<vmem>>, vector<1x1x128xf32>
    %31 = vector.shape_cast %30 : vector<1x1x128xf32> to vector<1x128xf32>
    %32 = vector.shape_cast %29 : vector<1x128xf32> to vector<1x1x128xf32>
    tpu.vector_store %arg8[%c0_18, %c0_19, %c0_20], %32 {strides = array<i32>} : memref<1x1x128xf32, #tpu.memory_space<vmem>>, vector<1x1x128xf32>,
    return
  }
  func.func @transform_0(%arg0: i32) -> (i32, i32) {
    %c0_i32 = arith.constant 0 : i32
    %c0_i32_0 = arith.constant 0 : i32
    return %arg0, %c0_i32 : i32, i32
  }
  func.func @transform_1(%arg0: i32) -> (i32, i32) {
    %c0_i32 = arith.constant 0 : i32
    %c0_i32_0 = arith.constant 0 : i32
    return %arg0, %c0_i32 : i32, i32
  }
  func.func @transform_2(%arg0: i32) -> (i32, i32) {
    %c0_i32 = arith.constant 0 : i32
    %c0_i32_0 = arith.constant 0 : i32
    %c0_i32_1 = arith.constant 0 : i32
    return %c0_i32, %c0_i32_0 : i32, i32
  }
  func.func @transform_3(%arg0: i32) -> (i32, i32) {
    %c0_i32 = arith.constant 0 : i32
    %c0_i32_0 = arith.constant 0 : i32
    %c0_i32_1 = arith.constant 0 : i32
    return %c0_i32, %c0_i32_0 : i32, i32
  }
  func.func @transform_4(%arg0: i32) -> (i32, i32) {
    %c0_i32 = arith.constant 0 : i32
    %c0_i32_0 = arith.constant 0 : i32
    %c0_i32_1 = arith.constant 0 : i32
    return %c0_i32, %c0_i32_0 : i32, i32
  }
  func.func @transform_5(%arg0: i32) -> (i32, i32) {
    %c0_i32 = arith.constant 0 : i32
    %c0_i32_0 = arith.constant 0 : i32
    %c0_i32_1 = arith.constant 0 : i32
    return %c0_i32, %c0_i32_0 : i32, i32
  }
  func.func @transform_6(%arg0: i32) -> (i32, i32) {
    %c0_i32 = arith.constant 0 : i32
    %c0_i32_0 = arith.constant 0 : i32
    %c0_i32_1 = arith.constant 0 : i32
    return %c0_i32, %c0_i32_0 : i32, i32
  }
  func.func @transform_7(%arg0: i32) -> (i32, i32, i32) {
    %c0_i32 = arith.constant 0 : i32
    %c0_i32_0 = arith.constant 0 : i32
    %c0_i32_1 = arith.constant 0 : i32
    return %arg0, %c0_i32, %c0_i32_0 : i32, i32, i32
  }
}

</mosaic_0001>

<bundles_post_ra>
// kernel: tpu_custom_call.1
= control target key start
LH: loop header
LB: loop body
LE: loop exit
PB: predicated region body
PF: predicated region fallthrough
CT: control target
= control target key end

     0   :  { %12 = vsyncpa [#allocation3], 0  ;;  %s1493_s0 = inlined_call_operand.hbm [shape: f32[8,52], index: 0, kind: input, shape index: {}]   ;;  %s1494_s1 = inlined_call_operand.hbm [shape: f32[8,20], index: 1, kind: input, shape index: {}]   ;;  %s1495_s2 = inlined_call_operand.hbm [shape: bf16[52,256], index: 2, kind: input, shape index: {}]   ;;  %s1496_s3 = inlined_call_operand.hbm [shape: bf16[20,256], index: 3, kind: input, shape index: {}]   ;;  %s1497_s4 = inlined_call_operand.vmem [shape: f32[1,256], index: 4, kind: input, shape index: {}]   ;;  %s1498_s5 = inlined_call_operand.hbm [shape: f32[256,128], index: 5, kind: input, shape index: {}]   ;;  %s1499_s6 = inlined_call_operand.vmem [shape: f32[1,128], index: 6, kind: input, shape index: {}]   ;;  %s1500_s7 = inlined_call_operand.hbm [shape: f32[1,1,128], index: 7, kind: output, shape index: {}]  }
   0x1   :  { %13 = vsyncpa [#allocation6], 0 }
   0x2   :  { %14 = vsyncpa [#allocation9], 0 }
   0x3   :  { %15 = vsyncpa [#allocation4], 0 }
   0x4   :  { %20 = vsyncadd [#allocation3], 1920  ;;  %s1216_s24 = smov [#allocation2]   ;;  %s1076_s28 = scalar_lea.hbm %s1493_s0, 128 }
   0x5   :  { %s21_s25 = sshll.u32 %s1216_s24, 4  ;;  %p1077_p0 = scmp.ne.s32.totalorder %s1493_s0, %s1076_s28  ;;  %s22_s25 = int_to_ptr.vmem [resolvable:$true] %s21_s25 }
   0x6   :  { %p1080_p1 = scmp.lt.u32.totalorder %s1076_s28, %s1493_s0 }
   0x8   :  { %p1082_p2 = pnand %p1080_p1, %p1077_p0 }
   0xa   :  { %1085 = shalt.err (!%p1082_p2)
}
   0xb   :  { %s1086_s10 = scalar_lea.vmem %s22_s25, 128  ;;  %s1090_s11 = scalar_lea.vmem %s22_s25, 2048 }
   0xc   :  { %p1087_p3 = scmp.ne.s32.totalorder %s22_s25, %s1086_s10  ;;  %p1091_p4 = scmp.lt.s32.totalorder %s22_s25, %s22_s25 }
   0xd   :  { %p1092_p5 = scmp.lt.s32.totalorder %s1090_s11, %s1086_s10 }
   0xf   :  { %p1093_p6 = por %p1092_p5, %p1091_p4 }
  0x11   :  { %p1094_p7 = pnand %p1093_p6, %p1087_p3 }
  0x13   :  { %1097 = shalt.err (!%p1094_p7)
}
  0x14   :  { %s1217_s12 = smov 128   ;;  %s1218_s13 = smov 8  }
  0x15   :  { %27 = dma.hbm_to_vmem [thread:$0]  %s1493_s0, 128, %s22_s25, [#allocation3], %s1217_s12, %s1217_s12, %s1218_s13  }
  0x16   :  { %32 = vsyncadd [#allocation6], 1920  ;;  %s1219_s16 = smov [#allocation5]   ;;  %s1220_s18 = smov [#allocation8]  }
  0x17   :  { %s33_s17 = sshll.u32 %s1219_s16, 4  ;;  %s57_s19 = sshll.u32 %s1220_s18, 4  ;;  %s34_s17 = int_to_ptr.vmem [resolvable:$true] %s33_s17  ;;  %s1280_s19 = int_to_ptr.vmem [resolvable:$true] %s57_s19 }
  0x18   :  { %s1098_s22 = scalar_lea.hbm %s1494_s1, 128 }
  0x19   :  { %p1099_p8 = scmp.ne.s32.totalorder %s1494_s1, %s1098_s22  ;;  %p1102_p9 = scmp.lt.u32.totalorder %s1098_s22, %s1494_s1 }
  0x1b   :  { %p1104_p10 = pnand %p1102_p9, %p1099_p8 }
  0x1d   :  { %1107 = shalt.err (!%p1104_p10)
}
  0x1e   :  { %s1108_s0 = scalar_lea.vmem %s34_s17, 128  ;;  %s1112_s25 = scalar_lea.vmem %s34_s17, 2048 }
  0x1f   :  { %p1109_p11 = scmp.ne.s32.totalorder %s34_s17, %s1108_s0  ;;  %p1113_p12 = scmp.lt.s32.totalorder %s34_s17, %s34_s17 }
  0x20   :  { %p1114_p13 = scmp.lt.s32.totalorder %s1112_s25, %s1108_s0 }
  0x22   :  { %p1115_p0 = por %p1114_p13, %p1113_p12 }
  0x24   :  { %p1116_p1 = pnand %p1115_p0, %p1109_p11 }
  0x26   :  { %1119 = shalt.err (!%p1116_p1)
}
  0x27   :  { %39 = dma.hbm_to_vmem [thread:$0]  %s1494_s1, 128, %s34_s17, [#allocation6], %s1217_s12, %s1217_s12, %s1218_s13  }
  0x28   :  { %s1120_s9 = scalar_lea.hbm %s1496_s3, 384 }
  0x29   :  { %p1121_p2 = scmp.ne.s32.totalorder %s1496_s3, %s1120_s9  ;;  %p1124_p3 = scmp.lt.u32.totalorder %s1120_s9, %s1496_s3 }
  0x2b   :  { %p1126_p4 = pnand %p1124_p3, %p1121_p2 }
  0x2d   :  { %1129 = shalt.err (!%p1126_p4)
}
  0x2e   :  { %s1130_s16 = scalar_lea.vmem %s1280_s19, 384  ;;  %p1135_p6 = scmp.lt.s32.totalorder %s1280_s19, %s1280_s19 }
  0x2f   :  { %p1131_p5 = scmp.ne.s32.totalorder %s1280_s19, %s1130_s16  ;;  %p1136_p7 = scmp.lt.s32.totalorder %s1130_s16, %s1130_s16 }
  0x31   :  { %p1137_p8 = por %p1136_p7, %p1135_p6 }
  0x33   :  { %p1138_p9 = pnand %p1137_p8, %p1131_p5 }
  0x35   :  { %1141 = shalt.err (!%p1138_p9)
}
  0x36   :  { %63 = dma.hbm_to_vmem [thread:$0]  %s1496_s3, 384, %s1280_s19, [#allocation9], %s1217_s12, %s1217_s12, %s1218_s13  }
  0x37   :  { %s1221_s18 = smov [#allocation7]   ;;  %s1222_s21 = smov [#allocation10]  }
  0x38   :  { %s45_s20 = sshll.u32 %s1221_s18, 4  ;;  %s71_s22 = sshll.u32 %s1222_s21, 4  ;;  %s46_s20 = int_to_ptr.vmem [resolvable:$true] %s45_s20  ;;  %s1317_s22 = int_to_ptr.vmem [resolvable:$true] %s71_s22 }
  0x39   :  { %s1142_s26 = scalar_lea.hbm %s1495_s2, 896 }
  0x3a   :  { %p1143_p10 = scmp.ne.s32.totalorder %s1495_s2, %s1142_s26  ;;  %p1146_p11 = scmp.lt.u32.totalorder %s1142_s26, %s1495_s2 }
  0x3c   :  { %p1148_p12 = pnand %p1146_p11, %p1143_p10 }
  0x3e   :  { %1151 = shalt.err (!%p1148_p12)
}
  0x3f   :  { %s1152_s3 = scalar_lea.vmem %s46_s20, 896  ;;  %p1157_p0 = scmp.lt.s32.totalorder %s46_s20, %s46_s20 }
  0x40   :  { %p1153_p13 = scmp.ne.s32.totalorder %s46_s20, %s1152_s3  ;;  %p1158_p1 = scmp.lt.s32.totalorder %s1152_s3, %s1152_s3 }
  0x42   :  { %p1159_p2 = por %p1158_p1, %p1157_p0 }
  0x44   :  { %p1160_p3 = pnand %p1159_p2, %p1153_p13 }
  0x46   :  { %1163 = shalt.err (!%p1160_p3)
}
  0x47   :  { %51 = dma.hbm_to_vmem [thread:$0]  %s1495_s2, 896, %s46_s20, [#allocation6], %s1217_s12, %s1217_s12, %s1218_s13  }
  0x48   :  { %s1164_s9 = scalar_lea.hbm %s1498_s5, 4096 }
  0x49   :  { %p1165_p4 = scmp.ne.s32.totalorder %s1498_s5, %s1164_s9  ;;  %p1168_p5 = scmp.lt.u32.totalorder %s1164_s9, %s1498_s5 }
  0x4b   :  { %p1170_p6 = pnand %p1168_p5, %p1165_p4 }
  0x4d   :  { %1173 = shalt.err (!%p1170_p6)
}
  0x4e   :  { %s1174_s16 = scalar_lea.vmem %s1317_s22, 4096  ;;  %p1179_p8 = scmp.lt.s32.totalorder %s1317_s22, %s1317_s22 }
  0x4f   :  { %p1175_p7 = scmp.ne.s32.totalorder %s1317_s22, %s1174_s16  ;;  %p1180_p9 = scmp.lt.s32.totalorder %s1174_s16, %s1174_s16 }
  0x51   :  { %p1181_p10 = por %p1180_p9, %p1179_p8 }
  0x53   :  { %p1182_p11 = pnand %p1181_p10, %p1175_p7 }
  0x55   :  { %1185 = shalt.err (!%p1182_p11)
}
  0x56   :  { %77 = dma.hbm_to_vmem [thread:$0]  %s1498_s5, 4096, %s1317_s22, [#allocation9], %s1217_s12, %s1217_s12, %s1218_s13  }
  0x57   :  { %1208 = dma.done.wait [#allocation3], 2048  }
  0x58   :  { %1209 = vsyncadd [#allocation3], 4294965248 }
  0x59   :  { %1210 = dma.done.wait [#allocation6], 2944  }
  0x5a   :  { %1211 = vsyncadd [#allocation6], 4294964352 }
  0x5b   :  { %1212 = dma.done.wait [#allocation9], 4480  }
  0x5c   :  { %1213 = vsyncadd [#allocation9], 4294962816  ;;  %v1223_v0 = vmov 0   ;;  %v1056_v1 = vld [vmem:[#allocation8 + $0x4] ss:$8 sps:$4 sm:$0xff]   ;;  %vm194_vm0 = vcmask 1041408  }
  0x5d   :  { %233 = vmatprep.mubr.bf16.mxu0 %v1223_v0  ;;  %273 = vmatprep.mubr.bf16.mxu1 %v1223_v0  ;;  %v1058_v2 = vld [vmem:[#allocation8] ss:$8 sps:$4 sm:$0xff]   ;;  %v153_v3 = vld [vmem:[#allocation8 + $0x10] sm:$0x33]  ;;  %vm169_vm1 = vcmask 162816   ;;  %v122_v13 = vld [vmem:[#allocation5 + $0x10] sm:$0xff] }
  0x5e   :  { %201 = vmatprep.subr.bf16.mxu0 %v1056_v1  ;;  %v871_v4 = vcombine.high %v153_v3, %v153_v3  ;;  %v870_v5 = vcombine.low %v153_v3, %v153_v3  ;;  %1011 = vmatprep.subr.bf16.mxu1 %v1056_v1  ;;  %v120_v6 = vld [vmem:[#allocation5] sm:$0xff]  ;;  %v121_v7 = vld [vmem:[#allocation5 + $0x8] sm:$0xff]  ;;  %v1066_v12 = vld [vmem:[#allocation7 + $0x14] ss:$8 sps:$4 sm:$0xff]   ;;  %vm349_vm2 = vcmask 424960   ;;  %s1224_s17 = smov [#allocation11]  }
  0x5f   :  { %202 = vmatpush1.bf16.msra.mxu0 %v1058_v2  ;;  %1013 = vmatpush1.bf16.msra.mxu1 %v1058_v2  ;;  %v1063_v9 = vld [vmem:[#allocation7 + $0x4] ss:$8 sps:$4 sm:$0xff]   ;;  %v136_v10 = vpack.c.bf16 %v121_v7, %v120_v6  ;;  %v1061_v11 = vld [vmem:[#allocation7] ss:$8 sps:$4 sm:$0xff]   ;;  %v123_v14 = vld [vmem:[#allocation5 + $0x18] sm:$0xff]  ;;  %s857_s18 = sshll.u32 %s1224_s17, 4  ;;  %s858_s18 = int_to_ptr.vmem [resolvable:$true] %s857_s18 }
  0x60   :  { %872 = vmatprep.subr.msk.bf16.mxu0 %vm194_vm0, %v871_v4  ;;  %v196_v8 = vsel %vm194_vm0, %v870_v5, 0  ;;  %1012 = vmatprep.subr.msk.bf16.mxu1 %vm194_vm0, %v871_v4  ;;  %v1064_v15 = vld [vmem:[#allocation7 + $0x10] ss:$8 sps:$4 sm:$0xff]   ;;  %v128_v16 = vld [vmem:[#allocation5 + $0x40] sm:$0xff]  ;;  %v129_v17 = vld [vmem:[#allocation5 + $0x48] sm:$0xff]  ;;  %v137_v21 = vpack.c.bf16 %v123_v14, %v122_v13  ;;  %s1186_s20 = scalar_lea.vmem %s858_s18, 16  ;;  %p1191_p13 = scmp.lt.s32.totalorder %s858_s18, %s858_s18 }
  0x61   :  { %v1069_v18 = vld [vmem:[#allocation7 + $0x24] ss:$8 sps:$4 sm:$0xff]   ;;  %v140_v19 = vpack.c.bf16 %v129_v17, %v128_v16  ;;  %v150_v20 = vld [vmem:[#allocation7 + $0x30] sm:$0x33]  ;;  %v1067_v22 = vld [vmem:[#allocation7 + $0x20] ss:$8 sps:$4 sm:$0xff]   ;;  %p1187_p12 = scmp.ne.s32.totalorder %s858_s18, %s1186_s20 }
  0x62   :  { %v130_v23 = vld [vmem:[#allocation5 + $0x50] sm:$0xff]  ;;  %v131_v24 = vld [vmem:[#allocation5 + $0x58] sm:$0xff]  ;;  %v888_v25 = vcombine.high %v150_v20, %v150_v20  ;;  %v887_v26 = vcombine.low %v150_v20, %v150_v20  ;;  %v124_v28 = vld [vmem:[#allocation5 + $0x20] sm:$0xff]  ;;  %s1190_s21 = scalar_lea.vmem %s858_s18, 32 }
  0x63   :  { %204 = vmatpush1.bf16.msra.mxu0 %v196_v8  ;;  %1014 = vmatpush1.bf16.msra.mxu1 %v196_v8  ;;  %v649_v27 = vld [vmem:[#allocation10 + $0x80] sm:$0xff]  ;;  %v125_v29 = vld [vmem:[#allocation5 + $0x28] sm:$0xff]  ;;  %v650_v30 = vld [vmem:[#allocation10 + $0x88] sm:$0xff]  ;;  %v141_v33 = vpack.c.bf16 %v131_v24, %v130_v23  ;;  %p1192_p0 = scmp.lt.s32.totalorder %s1190_s21, %s1186_s20 }
  0x64   :  { %380 = vmatprep.subr.bf16.mxu0 %v1063_v9  ;;  %v633_v31 = vld [vmem:[#allocation10] sm:$0xff]  ;;  %v634_v32 = vld [vmem:[#allocation10 + $0x8] sm:$0xff]  ;;  %v979_v34 = vpack.c.bf16 %v650_v30, %v649_v27  ;;  %v651_v36 = vld [vmem:[#allocation10 + $0x90] sm:$0xff]  ;;  %v375_v43 = vsel %vm194_vm0, %v887_v26, 0  ;;  %v138_v45 = vpack.c.bf16 %v125_v29, %v124_v28 }
  0x65   :  { %v981_v35 = vpack.c.bf16 %v634_v32, %v633_v31  ;;  %v652_v37 = vld [vmem:[#allocation10 + $0x98] sm:$0xff]  ;;  %v635_v38 = vld [vmem:[#allocation10 + $0x10] sm:$0xff]  ;;  %v653_v41 = vld [vmem:[#allocation10 + $0xa0] sm:$0xff]  ;;  %p1193_p1 = por %p1192_p0, %p1191_p13 }
  0x66   :  { %873 = vmatmul.mubr.msk.bf16.vlgmr.msra.gmra.mrb[0].mxu0 %vm169_vm1, %v136_v10  ;;  %877 = vmatmul.mubr.msk.bf16.vlgmr.msra.gmra.mrb[0].mxu1 %vm169_vm1, %v140_v19  ;;  %v983_v39 = vpack.c.bf16 %v652_v37, %v651_v36  ;;  %v636_v40 = vld [vmem:[#allocation10 + $0x18] sm:$0xff]  ;;  %v654_v42 = vld [vmem:[#allocation10 + $0xa8] sm:$0xff]  ;;  %v132_v46 = vld [vmem:[#allocation5 + $0x60] sm:$0xff] }
  0x67   :  { %381 = vmatpush1.bf16.msra.mxu0 %v1061_v11  ;;  %243 = vmatprep.mubr.bf16.mxu0 %v1223_v0  ;;  %v985_v44 = vpack.c.bf16 %v636_v40, %v635_v38  ;;  %v987_v47 = vpack.c.bf16 %v654_v42, %v653_v41  ;;  %v637_v48 = vld [vmem:[#allocation10 + $0x20] sm:$0xff]  ;;  %v638_v49 = vld [vmem:[#allocation10 + $0x28] sm:$0xff]  ;;  %v133_v50 = vld [vmem:[#allocation5 + $0x68] sm:$0xff]  ;;  %p1194_p2 = pnand %p1193_p1, %p1187_p12 }
  0x68   :  { %382 = vmatprep.subr.bf16.mxu0 %v1066_v12  ;;  %283 = vmatprep.mubr.bf16.mxu1 %v1223_v0  ;;  %v655_v51 = vld [vmem:[#allocation10 + $0xb0] sm:$0xff]  ;;  %v656_v52 = vld [vmem:[#allocation10 + $0xb8] sm:$0xff]  ;;  %v989_v53 = vpack.c.bf16 %v638_v49, %v637_v48  ;;  %v126_v54 = vld [vmem:[#allocation5 + $0x30] sm:$0xff]  ;;  %v142_v55 = vpack.c.bf16 %v133_v50, %v132_v46 }
  0x69   :  { %980 = vmatprep.subr.bf16.mxu1 %v979_v34  ;;  %v991_v56 = vpack.c.bf16 %v656_v52, %v655_v51  ;;  %v639_v57 = vld [vmem:[#allocation10 + $0x30] sm:$0xff]  ;;  %v640_v58 = vld [vmem:[#allocation10 + $0x38] sm:$0xff]  ;;  %v127_v59 = vld [vmem:[#allocation5 + $0x38] sm:$0xff] }
  0x6a   :  { %982 = vmatpush3.bf16.msra.mxu1 %v981_v35  ;;  %v657_v60 = vld [vmem:[#allocation10 + $0xc0] sm:$0xff]  ;;  %v658_v61 = vld [vmem:[#allocation10 + $0xc8] sm:$0xff]  ;;  %v993_v62 = vpack.c.bf16 %v640_v58, %v639_v57  ;;  %v139_v63 = vpack.c.bf16 %v127_v59, %v126_v54  ;;  %v659_v6 = vld [vmem:[#allocation10 + $0xd0] sm:$0xff]  ;;  %v495_v57 = vlaneseq }
  0x6b   :  { %383 = vmatpush1.bf16.msra.mxu0 %v1064_v15  ;;  %984 = vmatprep.subr.bf16.mxu1 %v983_v39  ;;  %v134_v1 = vld [vmem:[#allocation5 + $0x70] sm:$0xff]  ;;  %v995_v2 = vpack.c.bf16 %v658_v61, %v657_v60  ;;  %v642_v4 = vld [vmem:[#allocation10 + $0x48] sm:$0xff]  ;;  %v660_v7 = vld [vmem:[#allocation10 + $0xd8] sm:$0xff] }
  0x6c   :  { %384 = vmatprep.subr.bf16.mxu0 %v1069_v18  ;;  %v641_v3 = vld [vmem:[#allocation10 + $0x40] sm:$0xff]  ;;  %v135_v5 = vld [vmem:[#allocation5 + $0x78] sm:$0xff]  ;;  %v999_v10 = vpack.c.bf16 %v660_v7, %v659_v6  ;;  %v643_v11 = vld [vmem:[#allocation10 + $0x50] sm:$0xff]  ;;  %v496_v59 = vshrl.u32 %v495_v57, 7 }
  0x6d   :  { %v997_v8 = vpack.c.bf16 %v642_v4, %v641_v3  ;;  %v143_v9 = vpack.c.bf16 %v135_v5, %v134_v1  ;;  %v644_v12 = vld [vmem:[#allocation10 + $0x58] sm:$0xff]  ;;  %v96_v13 = vld [vmem:[#allocation2] sm:$0xff]  ;;  %v98_v17 = vld [vmem:[#allocation2 + $0x10] sm:$0xff] }
  0x6e   :  { %874 = vmatmul.mubr.msk.bf16.gmra.mrb[4].mxu0 %vm169_vm1, %v137_v21  ;;  %878 = vmatmul.mubr.msk.bf16.gmra.mrb[4].mxu1 %vm169_vm1, %v141_v33  ;;  %v97_v14 = vld [vmem:[#allocation2 + $0x8] sm:$0xff]  ;;  %v1001_v15 = vpack.c.bf16 %v644_v12, %v643_v11  ;;  %v99_v18 = vld [vmem:[#allocation2 + $0x18] sm:$0xff]  ;;  %v100_v20 = vld [vmem:[#allocation2 + $0x20] sm:$0xff] }
  0x6f   :  { %253 = vmatprep.mubr.bf16.mxu0 %v1223_v0  ;;  %385 = vmatpush1.bf16.msra.mxu0 %v1067_v22  ;;  %v112_v16 = vpack.c.bf16 %v97_v14, %v96_v13  ;;  %v113_v19 = vpack.c.bf16 %v99_v18, %v98_v17  ;;  %v101_v21 = vld [vmem:[#allocation2 + $0x28] sm:$0xff]  ;;  %v102_v23 = vld [vmem:[#allocation2 + $0x30] sm:$0xff]  ;;  %v103_v24 = vld [vmem:[#allocation2 + $0x38] sm:$0xff] }
  0x70   :  { %889 = vmatprep.subr.msk.bf16.mxu0 %vm194_vm0, %v888_v25  ;;  %293 = vmatprep.mubr.bf16.mxu1 %v1223_v0  ;;  %v114_v22 = vpack.c.bf16 %v101_v21, %v100_v20  ;;  %v115_v25 = vpack.c.bf16 %v103_v24, %v102_v23  ;;  %v104_v26 = vld [vmem:[#allocation2 + $0x40] sm:$0xff]  ;;  %v105_v27 = vld [vmem:[#allocation2 + $0x48] sm:$0xff]  ;;  %v106_v29 = vld [vmem:[#allocation2 + $0x50] sm:$0xff] }
  0x71   :  { %986 = vmatpush3.bf16.msra.mxu1 %v985_v44  ;;  %v116_v28 = vpack.c.bf16 %v105_v27, %v104_v26  ;;  %v107_v30 = vld [vmem:[#allocation2 + $0x58] sm:$0xff]  ;;  %v108_v32 = vld [vmem:[#allocation2 + $0x60] sm:$0xff]  ;;  %v109_v33 = vld [vmem:[#allocation2 + $0x68] sm:$0xff] }
  0x72   :  { %988 = vmatprep.subr.bf16.mxu1 %v987_v47  ;;  %v117_v31 = vpack.c.bf16 %v107_v30, %v106_v29  ;;  %v118_v34 = vpack.c.bf16 %v109_v33, %v108_v32  ;;  %v110_v35 = vld [vmem:[#allocation2 + $0x70] sm:$0xff]  ;;  %v111_v36 = vld [vmem:[#allocation2 + $0x78] sm:$0xff]  ;;  %v663_v44 = vld [vmem:[#allocation10 + $0xf0] sm:$0xff] }
  0x73   :  { %387 = vmatpush1.bf16.msra.mxu0 %v375_v43  ;;  %v119_v37 = vpack.c.bf16 %v111_v36, %v110_v35  ;;  %v661_v38 = vld [vmem:[#allocation10 + $0xe0] sm:$0xff]  ;;  %v662_v39 = vld [vmem:[#allocation10 + $0xe8] sm:$0xff]  ;;  %v647_v47 = vld [vmem:[#allocation10 + $0x70] sm:$0xff] }
  0x74   :  { %v1003_v40 = vpack.c.bf16 %v662_v39, %v661_v38  ;;  %v645_v41 = vld [vmem:[#allocation10 + $0x60] sm:$0xff]  ;;  %v646_v42 = vld [vmem:[#allocation10 + $0x68] sm:$0xff]  ;;  %v648_v48 = vld [vmem:[#allocation10 + $0x78] sm:$0xff] }
  0x75   :  { %990 = vmatpush3.bf16.msra.mxu1 %v989_v53  ;;  %v1005_v43 = vpack.c.bf16 %v646_v42, %v645_v41  ;;  %v1009_v49 = vpack.c.bf16 %v648_v48, %v647_v47  ;;  %v493_v1 = vld [vmem:[%s1497_s4] sm:$0x3] }
  0x76   :  { %875 = vmatmul.mubr.msk.bf16.gmra.mrb[8].mxu0 %vm169_vm1, %v138_v45  ;;  %879 = vmatmul.mubr.msk.bf16.gmra.mrb[8].mxu1 %vm169_vm1, %v142_v55  ;;  %v664_v45 = vld [vmem:[#allocation10 + $0xf8] sm:$0xff] }
  0x77   :  { %263 = vmatprep.mubr.bf16.mxu0 %v1223_v0  ;;  %992 = vmatprep.subr.bf16.mxu1 %v991_v56  ;;  %v1007_v46 = vpack.c.bf16 %v664_v45, %v663_v44 }
  0x78   :  { %303 = vmatprep.mubr.bf16.mxu1 %v1223_v0 }
  0x79   :  { %994 = vmatpush3.bf16.msra.mxu1 %v993_v62 }
  0x7a   :  { %996 = vmatprep.subr.bf16.mxu1 %v995_v2  ;;  %v501_v2 = vsub.s32 1, %v496_v59 }
  0x7c   :  { %v1424_v6 = vrot.slane %v493_v1, %v501_v2 }
  0x7d   :  { %998 = vmatpush3.bf16.msra.mxu1 %v997_v8 }
  0x7e   :  { %876 = vmatmul.mubr.msk.bf16.gmra.mrb[12].mxu0 %vm169_vm1, %v139_v63  ;;  %880 = vmatmul.mubr.msk.bf16.gmra.mrb[12].mxu1 %vm169_vm1, %v143_v9  ;;  %v497_v63 = vsub.s32 0, %v496_v59 }
  0x7f   :  { %412 = vmatprep.mubr.bf16.mxu0 %v1223_v0  ;;  %1000 = vmatprep.subr.bf16.mxu1 %v999_v10 }
  0x80   :  { %v1420_v4 = vrot.slane %v493_v1, %v497_v63 }
  0x81   :  { %1002 = vmatpush3.bf16.msra.mxu1 %v1001_v15 }
  0x82   :  { %1004 = vmatprep.subr.bf16.mxu1 %v1003_v40 }
  0x85   :  { %1006 = vmatpush3.bf16.msra.mxu1 %v1005_v43 }
  0x86   :  { %890 = vmatmul.mubr.msk.bf16.vlgmr.msra.gmra.mrb[0].mxu0 %vm349_vm2, %v112_v16  ;;  %1008 = vmatprep.subr.bf16.mxu1 %v1007_v46 }
  0x87   :  { %422 = vmatprep.mubr.bf16.mxu0 %v1223_v0 }
  0x89   :  { %1010 = vmatpush3.bf16.msra.mxu1 %v1009_v49 }
  0x8e   :  { %891 = vmatmul.mubr.msk.bf16.gmra.mrb[4].mxu0 %vm349_vm2, %v113_v19 }
  0x8f   :  { %432 = vmatprep.mubr.bf16.mxu0 %v1223_v0 }
  0x96   :  { %892 = vmatmul.mubr.msk.bf16.gmra.mrb[8].mxu0 %vm349_vm2, %v114_v22 }
  0x97   :  { %442 = vmatprep.mubr.bf16.mxu0 %v1223_v0 }
  0x9e   :  { %893 = vmatmul.mubr.msk.bf16.gmra.mrb[12].mxu0 %vm349_vm2, %v115_v25 }
  0x9f   :  { %452 = vmatprep.mubr.bf16.mxu0 %v1223_v0 }
  0xa6   :  { %894 = vmatmul.mubr.msk.bf16.gmra.mrb[16].mxu0 %vm349_vm2, %v116_v28 }
  0xa7   :  { %462 = vmatprep.mubr.bf16.mxu0 %v1223_v0 }
  0xae   :  { %895 = vmatmul.mubr.msk.bf16.gmra.mrb[20].mxu0 %vm349_vm2, %v117_v31 }
  0xaf   :  { %472 = vmatprep.mubr.bf16.mxu0 %v1223_v0 }
  0xb6   :  { %896 = vmatmul.mubr.msk.bf16.gmra.mrb[24].mxu0 %vm349_vm2, %v118_v34 }
  0xb7   :  { %482 = vmatprep.mubr.bf16.mxu0 %v1223_v0 }
  0xbe   :  { %897 = vmatmul.mubr.msk.bf16.gmra.mrb[28].mxu0 %vm349_vm2, %v119_v37 }
 0x139   :  { %v1391_v0 = vpop.f32.mrb[0].mxu1 }
 0x13a   :  { %v1393_v50 = vpop.f32.mrb[1].mxu1 }
 0x13b   :  { %v1395_v51 = vpop.f32.mrb[2].mxu1 }
 0x13c   :  { %v1397_v52 = vpop.f32.mrb[3].mxu1 }
 0x141   :  { %v1399_v53 = vpop.f32.mrb[4].mxu1 }
 0x142   :  { %v1401_v54 = vpop.f32.mrb[5].mxu1 }
 0x143   :  { %v1403_v55 = vpop.f32.mrb[6].mxu1 }
 0x144   :  { %v1405_v56 = vpop.f32.mrb[7].mxu1 }
 0x149   :  { %v1407_v58 = vpop.f32.mrb[8].mxu1 }
 0x14a   :  { %v1409_v60 = vpop.f32.mrb[9].mxu1 }
 0x14b   :  { %v1411_v61 = vpop.f32.mrb[10].mxu1 }
 0x14c   :  { %v1413_v62 = vpop.f32.mrb[11].mxu1 }
 0x151   :  { %v1418_v3 = vpop.f32.mrb[12].mxu1 }
 0x152   :  { %v1422_v5 = vpop.f32.mrb[13].mxu1 }
 0x153   :  { %v1426_v7 = vpop.f32.mrb[14].mxu1 }
 0x154   :  { %v1428_v8 = vpop.f32.mrb[15].mxu1 }
 0x159   :  { %v414_v9 = vpop.f32.mrb[0].mxu0 }
 0x15a   :  { %v505_v10 = vadd.f32 %v1420_v4, %v414_v9  ;;  %v416_v11 = vpop.f32.mrb[1].mxu0 }
 0x15b   :  { %v506_v12 = vadd.f32 %v1424_v6, %v416_v11  ;;  %v418_v13 = vpop.f32.mrb[2].mxu0 }
 0x15c   :  { %v569_v14 = vmul.f32 0.01, %v505_v10  ;;  %v507_v15 = vadd.f32 %v1420_v4, %v418_v13  ;;  %v420_v16 = vpop.f32.mrb[3].mxu0  ;;  %vm537_vm3 = vcmp.gt.f32.partialorder %v505_v10, 0.0 }
 0x15d   :  { %v570_v17 = vmul.f32 0.01, %v506_v12  ;;  %v508_v18 = vadd.f32 %v1424_v6, %v420_v16  ;;  %vm538_vm4 = vcmp.gt.f32.partialorder %v506_v12, 0.0 }
 0x15e   :  { %v601_v21 = vsel %vm537_vm3, %v505_v10, %v569_v14  ;;  %v571_v22 = vmul.f32 0.01, %v507_v15  ;;  %vm539_vm6 = vcmp.gt.f32.partialorder %v507_v15, 0.0 }
 0x15f   :  { %v572_v19 = vmul.f32 0.01, %v508_v18  ;;  %v602_v20 = vsel %vm538_vm4, %v506_v12, %v570_v17  ;;  %vm540_vm5 = vcmp.gt.f32.partialorder %v508_v18, 0.0 }
 0x160   :  { %729 = vmatprep.mubr.f32.mxu1 %v602_v20  ;;  %v603_v32 = vsel %vm539_vm6, %v507_v15, %v571_v22 }
 0x161   :  { %v424_v23 = vpop.f32.mrb[4].mxu0  ;;  %730 = vmatmul.mubr.f32.vlgmr.msra.gmra.mrb[16].mxu1 %v601_v21  ;;  %v604_v24 = vsel %vm540_vm5, %v508_v18, %v572_v19 }
 0x162   :  { %v509_v25 = vadd.f32 %v1420_v4, %v424_v23  ;;  %v426_v26 = vpop.f32.mrb[5].mxu0  ;;  %734 = vmatprep.mubr.f32.mxu1 %v604_v24 }
 0x163   :  { %v510_v27 = vadd.f32 %v1424_v6, %v426_v26  ;;  %v428_v28 = vpop.f32.mrb[6].mxu0 }
 0x164   :  { %v573_v29 = vmul.f32 0.01, %v509_v25  ;;  %v511_v30 = vadd.f32 %v1420_v4, %v428_v28  ;;  %v430_v31 = vpop.f32.mrb[7].mxu0  ;;  %vm541_vm8 = vcmp.gt.f32.partialorder %v509_v25, 0.0 }
 0x165   :  { %v574_v33 = vmul.f32 0.01, %v510_v27  ;;  %v512_v34 = vadd.f32 %v1424_v6, %v430_v31  ;;  %735 = vmatmul.mubr.f32.gmra.mrb[18].mxu1 %v603_v32  ;;  %vm542_vm7 = vcmp.gt.f32.partialorder %v510_v27, 0.0 }
 0x166   :  { %v575_v37 = vmul.f32 0.01, %v511_v30  ;;  %v605_v38 = vsel %vm541_vm8, %v509_v25, %v573_v29  ;;  %vm543_vm10 = vcmp.gt.f32.partialorder %v511_v30, 0.0 }
 0x167   :  { %v576_v35 = vmul.f32 0.01, %v512_v34  ;;  %v606_v36 = vsel %vm542_vm7, %v510_v27, %v574_v33  ;;  %vm544_vm9 = vcmp.gt.f32.partialorder %v512_v34, 0.0 }
 0x168   :  { %739 = vmatprep.mubr.f32.mxu1 %v606_v36  ;;  %v607_v48 = vsel %vm543_vm10, %v511_v30, %v575_v37 }
 0x169   :  { %v434_v39 = vpop.f32.mrb[8].mxu0  ;;  %740 = vmatmul.mubr.f32.gmra.mrb[20].mxu1 %v605_v38  ;;  %v608_v40 = vsel %vm544_vm9, %v512_v34, %v576_v35 }
 0x16a   :  { %v513_v41 = vadd.f32 %v1420_v4, %v434_v39  ;;  %v436_v42 = vpop.f32.mrb[9].mxu0  ;;  %744 = vmatprep.mubr.f32.mxu1 %v608_v40 }
 0x16b   :  { %v514_v43 = vadd.f32 %v1424_v6, %v436_v42  ;;  %v438_v44 = vpop.f32.mrb[10].mxu0 }
 0x16c   :  { %v577_v45 = vmul.f32 0.01, %v513_v41  ;;  %v515_v46 = vadd.f32 %v1420_v4, %v438_v44  ;;  %v440_v47 = vpop.f32.mrb[11].mxu0  ;;  %vm545_vm12 = vcmp.gt.f32.partialorder %v513_v41, 0.0 }
 0x16d   :  { %v578_v49 = vmul.f32 0.01, %v514_v43  ;;  %v516_v57 = vadd.f32 %v1424_v6, %v440_v47  ;;  %745 = vmatmul.mubr.f32.gmra.mrb[22].mxu1 %v607_v48  ;;  %vm546_vm11 = vcmp.gt.f32.partialorder %v514_v43, 0.0 }
 0x16e   :  { %v579_v1 = vmul.f32 0.01, %v515_v46  ;;  %v609_v2 = vsel %vm545_vm12, %v513_v41, %v577_v45  ;;  %vm547_vm14 = vcmp.gt.f32.partialorder %v515_v46, 0.0 }
 0x16f   :  { %v580_v59 = vmul.f32 0.01, %v516_v57  ;;  %v610_v63 = vsel %vm546_vm11, %v514_v43, %v578_v49  ;;  %vm548_vm13 = vcmp.gt.f32.partialorder %v516_v57, 0.0 }
 0x170   :  { %749 = vmatprep.mubr.f32.mxu1 %v610_v63  ;;  %v611_v18 = vsel %vm547_vm14, %v515_v46, %v579_v1 }
 0x171   :  { %v444_v9 = vpop.f32.mrb[12].mxu0  ;;  %750 = vmatmul.mubr.f32.gmra.mrb[24].mxu1 %v609_v2  ;;  %v612_v10 = vsel %vm548_vm13, %v516_v57, %v580_v59 }
 0x172   :  { %v517_v11 = vadd.f32 %v1420_v4, %v444_v9  ;;  %v446_v12 = vpop.f32.mrb[13].mxu0  ;;  %754 = vmatprep.mubr.f32.mxu1 %v612_v10 }
 0x173   :  { %v518_v13 = vadd.f32 %v1424_v6, %v446_v12  ;;  %v448_v14 = vpop.f32.mrb[14].mxu0 }
 0x174   :  { %v581_v15 = vmul.f32 0.01, %v517_v11  ;;  %v519_v16 = vadd.f32 %v1420_v4, %v448_v14  ;;  %v450_v17 = vpop.f32.mrb[15].mxu0  ;;  %vm549_vm0 = vcmp.gt.f32.partialorder %v517_v11, 0.0 }
 0x175   :  { %v582_v19 = vmul.f32 0.01, %v518_v13  ;;  %v520_v20 = vadd.f32 %v1424_v6, %v450_v17  ;;  %755 = vmatmul.mubr.f32.gmra.mrb[26].mxu1 %v611_v18  ;;  %vm550_vm15 = vcmp.gt.f32.partialorder %v518_v13, 0.0 }
 0x176   :  { %v583_v23 = vmul.f32 0.01, %v519_v16  ;;  %v613_v24 = vsel %vm549_vm0, %v517_v11, %v581_v15  ;;  %vm551_vm2 = vcmp.gt.f32.partialorder %v519_v16, 0.0 }
 0x177   :  { %v584_v21 = vmul.f32 0.01, %v520_v20  ;;  %v614_v22 = vsel %vm550_vm15, %v518_v13, %v582_v19  ;;  %vm552_vm1 = vcmp.gt.f32.partialorder %v520_v20, 0.0 }
 0x178   :  { %759 = vmatprep.mubr.f32.mxu1 %v614_v22  ;;  %v615_v34 = vsel %vm551_vm2, %v519_v16, %v583_v23 }
 0x179   :  { %v454_v25 = vpop.f32.mrb[16].mxu0  ;;  %760 = vmatmul.mubr.f32.gmra.mrb[28].mxu1 %v613_v24  ;;  %v616_v26 = vsel %vm552_vm1, %v520_v20, %v584_v21 }
 0x17a   :  { %v455_v27 = vadd.f32 %v454_v25, %v1391_v0  ;;  %v456_v28 = vpop.f32.mrb[17].mxu0  ;;  %764 = vmatprep.mubr.f32.mxu1 %v616_v26 }
 0x17b   :  { %v457_v29 = vadd.f32 %v456_v28, %v1393_v50  ;;  %v458_v30 = vpop.f32.mrb[18].mxu0 }
 0x17c   :  { %v521_v31 = vadd.f32 %v1420_v4, %v455_v27  ;;  %v459_v32 = vadd.f32 %v458_v30, %v1395_v51  ;;  %v460_v33 = vpop.f32.mrb[19].mxu0 }
 0x17d   :  { %v522_v35 = vadd.f32 %v1424_v6, %v457_v29  ;;  %v461_v36 = vadd.f32 %v460_v33, %v1397_v52  ;;  %765 = vmatmul.mubr.f32.gmra.mrb[30].mxu1 %v615_v34 }
 0x17e   :  { %v523_v37 = vadd.f32 %v1420_v4, %v459_v32  ;;  %v585_v38 = vmul.f32 0.01, %v521_v31  ;;  %vm553_vm4 = vcmp.gt.f32.partialorder %v521_v31, 0.0 }
 0x17f   :  { %v524_v0 = vadd.f32 %v1424_v6, %v461_v36  ;;  %vm554_vm3 = vcmp.gt.f32.partialorder %v522_v35, 0.0  ;;  %v586_v39 = vmul.f32 0.01, %v522_v35 }
 0x180   :  { %v617_v43 = vsel %vm553_vm4, %v521_v31, %v585_v38  ;;  %v587_v44 = vmul.f32 0.01, %v523_v37  ;;  %vm555_vm6 = vcmp.gt.f32.partialorder %v523_v37, 0.0 }
 0x181   :  { %v464_v50 = vpop.f32.mrb[20].mxu0  ;;  %v618_v40 = vsel %vm554_vm3, %v522_v35, %v586_v39  ;;  %vm556_vm5 = vcmp.gt.f32.partialorder %v524_v0, 0.0  ;;  %v588_v41 = vmul.f32 0.01, %v524_v0 }
 0x182   :  { %v465_v51 = vadd.f32 %v464_v50, %v1399_v53  ;;  %v466_v42 = vpop.f32.mrb[21].mxu0  ;;  %769 = vmatprep.mubr.f32.mxu1 %v618_v40  ;;  %v619_v63 = vsel %vm555_vm6, %v523_v37, %v587_v44 }
 0x183   :  { %v467_v52 = vadd.f32 %v466_v42, %v1401_v54  ;;  %v468_v45 = vpop.f32.mrb[22].mxu0  ;;  %770 = vmatmul.mubr.f32.gmra.mrb[32].mxu1 %v617_v43  ;;  %v620_v46 = vsel %vm556_vm5, %v524_v0, %v588_v41 }
 0x184   :  { %v525_v47 = vadd.f32 %v1420_v4, %v465_v51  ;;  %v469_v48 = vadd.f32 %v468_v45, %v1403_v55  ;;  %v470_v49 = vpop.f32.mrb[23].mxu0  ;;  %774 = vmatprep.mubr.f32.mxu1 %v620_v46 }
 0x185   :  { %v526_v57 = vadd.f32 %v1424_v6, %v467_v52  ;;  %v471_v53 = vadd.f32 %v470_v49, %v1405_v56 }
 0x186   :  { %v527_v59 = vadd.f32 %v1420_v4, %v469_v48  ;;  %v589_v1 = vmul.f32 0.01, %v525_v47  ;;  %vm557_vm8 = vcmp.gt.f32.partialorder %v525_v47, 0.0 }
 0x187   :  { %v528_v54 = vadd.f32 %v1424_v6, %v471_v53  ;;  %775 = vmatmul.mubr.f32.gmra.mrb[34].mxu1 %v619_v63  ;;  %vm558_vm7 = vcmp.gt.f32.partialorder %v526_v57, 0.0  ;;  %v590_v2 = vmul.f32 0.01, %v526_v57 }
 0x188   :  { %v621_v13 = vsel %vm557_vm8, %v525_v47, %v589_v1  ;;  %v591_v56 = vmul.f32 0.01, %v527_v59  ;;  %vm559_vm10 = vcmp.gt.f32.partialorder %v527_v59, 0.0 }
 0x189   :  { %v474_v9 = vpop.f32.mrb[24].mxu0  ;;  %v622_v10 = vsel %vm558_vm7, %v526_v57, %v590_v2  ;;  %vm560_vm9 = vcmp.gt.f32.partialorder %v528_v54, 0.0  ;;  %v592_v55 = vmul.f32 0.01, %v528_v54 }
 0x18a   :  { %v475_v11 = vadd.f32 %v474_v9, %v1407_v58  ;;  %v476_v12 = vpop.f32.mrb[25].mxu0  ;;  %779 = vmatprep.mubr.f32.mxu1 %v622_v10  ;;  %v623_v22 = vsel %vm559_vm10, %v527_v59, %v591_v56 }
 0x18b   :  { %v477_v14 = vadd.f32 %v476_v12, %v1409_v60  ;;  %v478_v15 = vpop.f32.mrb[26].mxu0  ;;  %780 = vmatmul.mubr.f32.gmra.mrb[36].mxu1 %v621_v13  ;;  %v624_v16 = vsel %vm560_vm9, %v528_v54, %v592_v55 }
 0x18c   :  { %v529_v17 = vadd.f32 %v1420_v4, %v475_v11  ;;  %v479_v18 = vadd.f32 %v478_v15, %v1411_v61  ;;  %v480_v19 = vpop.f32.mrb[27].mxu0  ;;  %784 = vmatprep.mubr.f32.mxu1 %v624_v16 }
 0x18d   :  { %v530_v20 = vadd.f32 %v1424_v6, %v477_v14  ;;  %v481_v58 = vadd.f32 %v480_v19, %v1413_v62 }
 0x18e   :  { %v531_v21 = vadd.f32 %v1420_v4, %v479_v18  ;;  %v593_v23 = vmul.f32 0.01, %v529_v17  ;;  %vm561_vm12 = vcmp.gt.f32.partialorder %v529_v17, 0.0 }
 0x18f   :  { %v532_v60 = vadd.f32 %v1424_v6, %v481_v58  ;;  %785 = vmatmul.mubr.f32.gmra.mrb[38].mxu1 %v623_v22  ;;  %vm562_vm11 = vcmp.gt.f32.partialorder %v530_v20, 0.0  ;;  %v594_v24 = vmul.f32 0.01, %v530_v20 }
 0x190   :  { %v625_v29 = vsel %vm561_vm12, %v529_v17, %v593_v23  ;;  %v595_v62 = vmul.f32 0.01, %v531_v21  ;;  %vm563_vm14 = vcmp.gt.f32.partialorder %v531_v21, 0.0 }
 0x191   :  { %v484_v25 = vpop.f32.mrb[28].mxu0  ;;  %v626_v26 = vsel %vm562_vm11, %v530_v20, %v594_v24  ;;  %vm564_vm13 = vcmp.gt.f32.partialorder %v532_v60, 0.0  ;;  %v596_v61 = vmul.f32 0.01, %v532_v60 }
 0x192   :  { %v485_v27 = vadd.f32 %v484_v25, %v1418_v3  ;;  %v486_v28 = vpop.f32.mrb[29].mxu0  ;;  %789 = vmatprep.mubr.f32.mxu1 %v626_v26  ;;  %v627_v38 = vsel %vm563_vm14, %v531_v21, %v595_v62 }
 0x193   :  { %v487_v30 = vadd.f32 %v486_v28, %v1422_v5  ;;  %v488_v31 = vpop.f32.mrb[30].mxu0  ;;  %790 = vmatmul.mubr.f32.gmra.mrb[40].mxu1 %v625_v29  ;;  %v628_v32 = vsel %vm564_vm13, %v532_v60, %v596_v61 }
 0x194   :  { %v533_v33 = vadd.f32 %v1420_v4, %v485_v27  ;;  %v489_v34 = vadd.f32 %v488_v31, %v1426_v7  ;;  %v490_v35 = vpop.f32.mrb[31].mxu0  ;;  %794 = vmatprep.mubr.f32.mxu1 %v628_v32 }
 0x195   :  { %v534_v36 = vadd.f32 %v1424_v6, %v487_v30  ;;  %v491_v3 = vadd.f32 %v490_v35, %v1428_v8 }
 0x196   :  { %v535_v37 = vadd.f32 %v1420_v4, %v489_v34  ;;  %v597_v0 = vmul.f32 0.01, %v533_v33  ;;  %vm565_vm0 = vcmp.gt.f32.partialorder %v533_v33, 0.0 }
 0x197   :  { %v536_v5 = vadd.f32 %v1424_v6, %v491_v3  ;;  %795 = vmatmul.mubr.f32.gmra.mrb[42].mxu1 %v627_v38  ;;  %vm566_vm15 = vcmp.gt.f32.partialorder %v534_v36, 0.0  ;;  %v598_v39 = vmul.f32 0.01, %v534_v36 }
 0x198   :  { %v629_v7 = vsel %vm565_vm0, %v533_v33, %v597_v0  ;;  %v599_v41 = vmul.f32 0.01, %v535_v37  ;;  %vm567_vm2 = vcmp.gt.f32.partialorder %v535_v37, 0.0  ;;  %v842_v33 = vld [vmem:[%s1499_s6] sm:$0x1] }
 0x199   :  { %v630_v50 = vsel %vm566_vm15, %v534_v36, %v598_v39  ;;  %vm568_vm1 = vcmp.gt.f32.partialorder %v536_v5, 0.0  ;;  %v600_v40 = vmul.f32 0.01, %v536_v5 }
 0x19a   :  { %799 = vmatprep.mubr.f32.mxu1 %v630_v50  ;;  %v631_v8 = vsel %vm567_vm2, %v535_v37, %v599_v41 }
 0x19b   :  { %800 = vmatmul.mubr.f32.gmra.mrb[44].mxu1 %v629_v7  ;;  %v632_v51 = vsel %vm568_vm1, %v536_v5, %v600_v40 }
 0x19c   :  { %804 = vmatprep.mubr.f32.mxu1 %v632_v51 }
 0x19f   :  { %805 = vmatmul.mubr.f32.gmra.mrb[46].mxu1 %v631_v8 }
 0x234   :  { %v931_v4 = vpop.f32.mrb[16].mxu1 }
 0x235   :  { %v932_v42 = vpop.f32.mrb[17].mxu1 }
 0x236   :  { %v933_v43 = vadd.f32 %v932_v42, %v931_v4 }
 0x238   :  { %v934_v6 = vpop.f32.mrb[18].mxu1  ;;  %810 = vxpose.xlu0.b32.start [1/16] (narrow) %v933_v43, 8 }
 0x239   :  { %v935_v44 = vpop.f32.mrb[19].mxu1 }
 0x23a   :  { %v936_v52 = vadd.f32 %v935_v44, %v934_v6 }
 0x23c   :  { %v937_v45 = vpop.f32.mrb[20].mxu1  ;;  %811 = vxpose.xlu0.b32.cont [2/16] (narrow) %v936_v52, 8 }
 0x23d   :  { %v938_v46 = vpop.f32.mrb[21].mxu1 }
 0x23e   :  { %v939_v47 = vadd.f32 %v938_v46, %v937_v45 }
 0x240   :  { %v940_v48 = vpop.f32.mrb[22].mxu1  ;;  %812 = vxpose.xlu0.b32.cont [3/16] (narrow) %v939_v47, 8 }
 0x241   :  { %v941_v49 = vpop.f32.mrb[23].mxu1 }
 0x242   :  { %v942_v57 = vadd.f32 %v941_v49, %v940_v48 }
 0x244   :  { %v943_v53 = vpop.f32.mrb[24].mxu1  ;;  %813 = vxpose.xlu0.b32.cont [4/16] (narrow) %v942_v57, 8 }
 0x245   :  { %v944_v59 = vpop.f32.mrb[25].mxu1 }
 0x246   :  { %v945_v63 = vadd.f32 %v944_v59, %v943_v53 }
 0x248   :  { %v946_v1 = vpop.f32.mrb[26].mxu1  ;;  %814 = vxpose.xlu0.b32.cont [5/16] (narrow) %v945_v63, 8 }
 0x249   :  { %v947_v54 = vpop.f32.mrb[27].mxu1 }
 0x24a   :  { %v948_v2 = vadd.f32 %v947_v54, %v946_v1 }
 0x24c   :  { %v949_v9 = vpop.f32.mrb[28].mxu1  ;;  %815 = vxpose.xlu0.b32.cont [6/16] (narrow) %v948_v2, 8 }
 0x24d   :  { %v950_v10 = vpop.f32.mrb[29].mxu1 }
 0x24e   :  { %v951_v55 = vadd.f32 %v950_v10, %v949_v9 }
 0x250   :  { %v952_v11 = vpop.f32.mrb[30].mxu1  ;;  %816 = vxpose.xlu0.b32.cont [7/16] (narrow) %v951_v55, 8 }
 0x251   :  { %v953_v12 = vpop.f32.mrb[31].mxu1 }
 0x252   :  { %v954_v13 = vadd.f32 %v953_v12, %v952_v11 }
 0x254   :  { %817 = vxpose.xlu0.b32.cont [8/16] (narrow) %v954_v13, 8 }
 0x256   :  { %v955_v56 = vpop.f32.mrb[32].mxu1 }
 0x257   :  { %v956_v14 = vpop.f32.mrb[33].mxu1 }
 0x258   :  { %v957_v15 = vadd.f32 %v956_v14, %v955_v56 }
 0x25a   :  { %v958_v16 = vpop.f32.mrb[34].mxu1  ;;  %818 = vxpose.xlu0.b32.cont [9/16] (narrow) %v957_v15, 8 }
 0x25b   :  { %v959_v17 = vpop.f32.mrb[35].mxu1 }
 0x25c   :  { %v960_v18 = vadd.f32 %v959_v17, %v958_v16 }
 0x25e   :  { %v961_v19 = vpop.f32.mrb[36].mxu1  ;;  %819 = vxpose.xlu0.b32.cont [10/16] (narrow) %v960_v18, 8 }
 0x25f   :  { %v962_v20 = vpop.f32.mrb[37].mxu1 }
 0x260   :  { %v963_v58 = vadd.f32 %v962_v20, %v961_v19 }
 0x262   :  { %v964_v21 = vpop.f32.mrb[38].mxu1  ;;  %820 = vxpose.xlu0.b32.cont [11/16] (narrow) %v963_v58, 8 }
 0x263   :  { %v965_v22 = vpop.f32.mrb[39].mxu1 }
 0x264   :  { %v966_v23 = vadd.f32 %v965_v22, %v964_v21 }
 0x266   :  { %v967_v60 = vpop.f32.mrb[40].mxu1  ;;  %821 = vxpose.xlu0.b32.cont [12/16] (narrow) %v966_v23, 8 }
 0x267   :  { %v968_v24 = vpop.f32.mrb[41].mxu1 }
 0x268   :  { %v969_v25 = vadd.f32 %v968_v24, %v967_v60 }
 0x26a   :  { %v970_v26 = vpop.f32.mrb[42].mxu1  ;;  %822 = vxpose.xlu0.b32.cont [13/16] (narrow) %v969_v25, 8 }
 0x26b   :  { %v971_v61 = vpop.f32.mrb[43].mxu1 }
 0x26c   :  { %v972_v27 = vadd.f32 %v971_v61, %v970_v26 }
 0x26e   :  { %v973_v28 = vpop.f32.mrb[44].mxu1  ;;  %823 = vxpose.xlu0.b32.cont [14/16] (narrow) %v972_v27, 8 }
 0x26f   :  { %v974_v29 = vpop.f32.mrb[45].mxu1 }
 0x270   :  { %v975_v62 = vadd.f32 %v974_v29, %v973_v28 }
 0x272   :  { %v976_v30 = vpop.f32.mrb[46].mxu1  ;;  %824 = vxpose.xlu0.b32.cont [15/16] (narrow) %v975_v62, 8 }
 0x273   :  { %v977_v31 = vpop.f32.mrb[47].mxu1 }
 0x274   :  { %v978_v32 = vadd.f32 %v977_v31, %v976_v30 }
 0x276   :  { %825 = vxpose.xlu0.b32.end [16/16] (narrow) %v978_v32, 8 }
 0x2ba   :  { %v826_v34 = vpop.trf.xlu0 }
 0x2bb   :  { %v843_v35 = vadd.f32 %v842_v33, %v826_v34 }
 0x2bd   :  { %v898_v36 = vmul.f32 -1.442695, %v843_v35 }
 0x2bf   :  { %1072 = vpow2.f32 %v898_v36 }
 0x2c9   :  { %v1073_v3 = vpop.eup %1072 }
 0x2ca   :  { %v847_v37 = vadd.f32 1.0, %v1073_v3 }
 0x2cc   :  { %1074 = vrcp.f32 %v847_v37 }
 0x2d6   :  { %v1075_v38 = vpop.eup %1074 }
 0x2d7   :  { %850 = vst [vmem:[#allocation11] sm:$0x1] %v1075_v38 }
 0x2d8   :  { %1197 = shalt.err (!%p1194_p2)
}
 0x2d9   :  { %s1198_s23 = scalar_lea.hbm %s1500_s7, 16 }
 0x2da   :  { %p1199_p3 = scmp.ne.s32.totalorder %s1500_s7, %s1198_s23  ;;  %p1202_p4 = scmp.lt.u32.totalorder %s1198_s23, %s1500_s7 }
 0x2dc   :  { %p1204_p5 = pnand %p1202_p4, %p1199_p3 }
 0x2de   :  { %1207 = shalt.err (!%p1204_p5)
}
 0x2df   :  { %860 = dma.vmem_to_hbm [thread:$0]  %s858_s18, 16, %s1500_s7, [#allocation4]  }
 0x2e0   :  { %1214 = dma.done.wait [#allocation4], 16  }
 0x2e1   :  { %1215 = vsyncadd [#allocation4], 4294967280 }
 0x2e2   :  { %864 = vsyncpa [#allocation3], 1 }
 0x2e3   :  { %865 = vsyncpa [#allocation6], 1 }
 0x2e4   :  { %866 = vsyncpa [#allocation9], 1 }
 0x2e5   :  { %867 = vsyncpa [#allocation4], 1 }

</bundles_post_ra>
